<compile_context>
chip_gen: v5e
topology: v5e:2x2
jax: 0.10.0
libtpu: 0.0.40
codegen_flags: <defaults>
</compile_context>

<pallas_src>
import functools

import jax
import jax.numpy as jnp
from jax import lax
from jax.experimental import pallas as pl
from jax.experimental.pallas import tpu as pltpu

_LIMIT = 64
_LANES = 128
_SUBLANES = 8
_UNROLL = 4                    # dynamic-path fori_loop unroll factor
_TILE_ROWS = 1024              # tiled path: 1024x128 f32 = 512 KiB per buffer
_TILED_THRESHOLD_ROWS = 4096   # switch to the gridded path above ~2 MiB of data


def _folded_step(u):
    # With u = 0.5*v:  v' = sigmoid(v) = 0.5*tanh(0.5*v)+0.5  =>  u' = 0.25*tanh(u)+0.25
    return 0.25 * jnp.tanh(u) + 0.25


# ---------------------------------------------------------------------------
# Static-trip-count kernel: loop fully unrolled at trace time.
# ---------------------------------------------------------------------------
def _static_kernel(x_ref, o_ref, *, n_iters):
    u = 0.5 * x_ref[...]
    for _ in range(n_iters):
        u = _folded_step(u)
    o_ref[...] = 2.0 * u


def _loop_sigmoid_static(x2d, n_iters):
    """Gridless whole-array VMEM path (small payloads)."""
    rows, lanes = x2d.shape
    return pl.pallas_call(
        functools.partial(_static_kernel, n_iters=n_iters),
        out_shape=jax.ShapeDtypeStruct((rows, lanes), x2d.dtype),
        in_specs=[pl.BlockSpec(memory_space=pltpu.MemorySpace.VMEM)],
        out_specs=pl.BlockSpec(memory_space=pltpu.MemorySpace.VMEM),
        input_output_aliases={0: 0},
        cost_estimate=pl.CostEstimate(
            flops=(2 * n_iters + 2) * rows * lanes,
            transcendentals=n_iters * rows * lanes,
            bytes_accessed=2 * rows * lanes * x2d.dtype.itemsize,
        ),
    )(x2d)


def _loop_sigmoid_static_tiled(x2d, n_iters, tile_rows):
    """Rows-tiled path for large inputs: respects v7x's smaller VMEM and lets
    its two TensorCores split the (parallel) rows axis."""
    rows, lanes = x2d.shape
    assert rows % tile_rows == 0
    return pl.pallas_call(
        functools.partial(_static_kernel, n_iters=n_iters),
        out_shape=jax.ShapeDtypeStruct((rows, lanes), x2d.dtype),
        grid=(rows // tile_rows,),
        in_specs=[pl.BlockSpec((tile_rows, lanes), lambda i: (i, 0))],
        out_specs=pl.BlockSpec((tile_rows, lanes), lambda i: (i, 0)),
        input_output_aliases={0: 0},
        cost_estimate=pl.CostEstimate(
            flops=(2 * n_iters + 2) * rows * lanes,
            transcendentals=n_iters * rows * lanes,
            bytes_accessed=2 * rows * lanes * x2d.dtype.itemsize,
        ),
        compiler_params=pltpu.CompilerParams(
            dimension_semantics=("parallel",)),
    )(x2d)


# ---------------------------------------------------------------------------
# Dynamic-counter fallback: counter lands in SMEM via scalar prefetch.
# fori_loop is unrolled by _UNROLL; a small dynamic remainder loop runs first.
# ---------------------------------------------------------------------------
def _dynamic_kernel(counter_ref, x_ref, o_ref):
    n_iters = jnp.maximum(_LIMIT - counter_ref[0], 0)
    rem = n_iters % _UNROLL
    main = n_iters // _UNROLL

    u = 0.5 * x_ref[...]

    # Remainder steps (0 .. _UNROLL-1 single steps).
    u = lax.fori_loop(0, rem, lambda _i, v: _folded_step(v), u)

    # Main loop: _UNROLL sigmoid steps per iteration (unrolled body).
    def body(_i, v):
        for _ in range(_UNROLL):
            v = _folded_step(v)
        return v

    u = lax.fori_loop(0, main, body, u)
    o_ref[...] = 2.0 * u


def _loop_sigmoid_dynamic(x2d, counter):
    rows, lanes = x2d.shape
    counter_arr = jnp.asarray(counter, dtype=jnp.int32).reshape((1,))
    return pl.pallas_call(
        _dynamic_kernel,
        out_shape=jax.ShapeDtypeStruct((rows, lanes), x2d.dtype),
        grid_spec=pltpu.PrefetchScalarGridSpec(
            num_scalar_prefetch=1,
            grid=(1,),
            in_specs=[pl.BlockSpec((rows, lanes), lambda i, c: (0, 0))],
            out_specs=pl.BlockSpec((rows, lanes), lambda i, c: (0, 0)),
        ),
        # operand 0 is the scalar-prefetch counter; operand 1 is x2d -> output 0.
        input_output_aliases={1: 0},
        cost_estimate=pl.CostEstimate(
            flops=(2 * _LIMIT + 2) * rows * lanes,
            transcendentals=_LIMIT * rows * lanes,
            bytes_accessed=2 * rows * lanes * x2d.dtype.itemsize,
        ),
        compiler_params=pltpu.CompilerParams(
            dimension_semantics=("arbitrary",)),
    )(counter_arr, x2d)


# ---------------------------------------------------------------------------
# Public wrapper (mirrors Model_2.forward(x, counter))
# ---------------------------------------------------------------------------
def loop_sigmoid(x, counter):
    """Applies sigmoid to x (64 - counter) times (the Model_2 while loop).
    counter may be a Python/NumPy int, a concrete JAX scalar, or a traced scalar."""
    orig_shape = x.shape
    total = x.size

    # Resolve the trip count statically whenever the counter is concrete.
    try:
        n_iters = max(_LIMIT - int(counter), 0)
    except (TypeError,
            jax.errors.ConcretizationTypeError,
            jax.errors.TracerIntegerConversionError):
        n_iters = None

    # Identity short-circuit: no kernel launch, no HBM round trip.
    if n_iters == 0:
        return x

    # Flatten and pad to a lane-dense (rows, 128) slab (rows multiple of 8).
    pad_unit = _SUBLANES * _LANES
    padded_total = ((total + pad_unit - 1) // pad_unit) * pad_unit
    flat = x.reshape(-1)
    if padded_total != total:
        flat = jnp.pad(flat, (0, padded_total - total))
    rows = padded_total // _LANES
    x2d = flat.reshape(rows, _LANES)

    if n_iters is not None:
        if rows > _TILED_THRESHOLD_ROWS:
            padded_rows = ((rows + _TILE_ROWS - 1) // _TILE_ROWS) * _TILE_ROWS
            if padded_rows != rows:
                x2d = jnp.pad(x2d, ((0, padded_rows - rows), (0, 0)))
            out2d = _loop_sigmoid_static_tiled(x2d, n_iters, _TILE_ROWS)
            out2d = out2d[:rows]
        else:
            out2d = _loop_sigmoid_static(x2d, n_iters)
    else:
        out2d = _loop_sigmoid_dynamic(x2d, counter)

    return out2d.reshape(-1)[:total].reshape(orig_shape)


if __name__ == "__main__":
    key = jax.random.PRNGKey(0)
    x = jax.random.normal(key, (2, 4, 16, 16), dtype=jnp.float32)
    counter = 60  # -> 4 sigmoid applications

    # Plain-JAX reference (mirrors the PyTorch while loop).
    def ref_fn(v, c):
        while c < _LIMIT:
            v = jax.nn.sigmoid(v)
            c += 1
        return v

    ref = ref_fn(x, counter)

    # 1) static (unrolled, gridless) path
    y_static = jax.block_until_ready(loop_sigmoid(x, counter))
    assert jnp.allclose(y_static, ref, atol=1e-6), "static path mismatch"

    # 2) dynamic (SMEM scalar-prefetch, unrolled fori_loop) path via traced counter
    y_dyn = jax.block_until_ready(jax.jit(loop_sigmoid)(x, jnp.int32(counter)))
    assert jnp.allclose(y_dyn, ref, atol=1e-6), "dynamic path mismatch"

    # 3) counter already >= 64 -> identity short-circuit (no kernel launch)
    y_id = jax.block_until_ready(loop_sigmoid(x, 70))
    assert jnp.allclose(y_id, x), "identity path mismatch"

    # 4) rows-tiled grid path (exercised with a small tile for verification)
    x2d = x.reshape(-1, _LANES)
    y_tiled = jax.block_until_ready(
        _loop_sigmoid_static_tiled(x2d, _LIMIT - counter, tile_rows=8))
    assert jnp.allclose(y_tiled.reshape(x.shape), ref, atol=1e-6), "tiled path mismatch"

    # 5) arbitrary (non-multiple-of-128) shape -> padded slab, sliced back
    x_odd = jax.random.normal(jax.random.PRNGKey(1), (3, 5, 7), dtype=jnp.float32)
    y_odd = jax.block_until_ready(loop_sigmoid(x_odd, counter))
    assert jnp.allclose(y_odd, ref_fn(x_odd, counter), atol=1e-6), "padded path mismatch"

    print("KERNEL_OK")
</pallas_src>

<mosaic_0001>
module attributes {stable_mosaic.version = 11 : i64} {
  func.func @_static_kernel(%arg0: memref<16x128xf32, #tpu.memory_space<vmem>>, %arg1: memref<16x128xf32, #tpu.memory_space<vmem>>) attributes {dimension_semantics = [], scalar_prefetch = 0 : i64, scratch_operands = 0 : i64, tpu.core_type = #tpu.core_type<tc>} {
    %c0 = arith.constant 0 : index
    %c0_0 = arith.constant 0 : index
    %0 = vector.load %arg0[%c0, %c0_0] : memref<16x128xf32, #tpu.memory_space<vmem>>, vector<16x128xf32>
    %cst = arith.constant 5.000000e-01 : f32
    %1 = vector.broadcast %cst : f32 to vector<16x128xf32>
    %2 = arith.mulf %1, %0 : vector<16x128xf32>
    %3 = math.tanh %2 : vector<16x128xf32>
    %cst_1 = arith.constant 2.500000e-01 : f32
    %4 = vector.broadcast %cst_1 : f32 to vector<16x128xf32>
    %5 = arith.mulf %4, %3 : vector<16x128xf32>
    %cst_2 = arith.constant 2.500000e-01 : f32
    %6 = vector.broadcast %cst_2 : f32 to vector<16x128xf32>
    %7 = arith.addf %5, %6 : vector<16x128xf32>
    %8 = math.tanh %7 : vector<16x128xf32>
    %cst_3 = arith.constant 2.500000e-01 : f32
    %9 = vector.broadcast %cst_3 : f32 to vector<16x128xf32>
    %10 = arith.mulf %9, %8 : vector<16x128xf32>
    %cst_4 = arith.constant 2.500000e-01 : f32
    %11 = vector.broadcast %cst_4 : f32 to vector<16x128xf32>
    %12 = arith.addf %10, %11 : vector<16x128xf32>
    %13 = math.tanh %12 : vector<16x128xf32>
    %cst_5 = arith.constant 2.500000e-01 : f32
    %14 = vector.broadcast %cst_5 : f32 to vector<16x128xf32>
    %15 = arith.mulf %14, %13 : vector<16x128xf32>
    %cst_6 = arith.constant 2.500000e-01 : f32
    %16 = vector.broadcast %cst_6 : f32 to vector<16x128xf32>
    %17 = arith.addf %15, %16 : vector<16x128xf32>
    %18 = math.tanh %17 : vector<16x128xf32>
    %cst_7 = arith.constant 2.500000e-01 : f32
    %19 = vector.broadcast %cst_7 : f32 to vector<16x128xf32>
    %20 = arith.mulf %19, %18 : vector<16x128xf32>
    %cst_8 = arith.constant 2.500000e-01 : f32
    %21 = vector.broadcast %cst_8 : f32 to vector<16x128xf32>
    %22 = arith.addf %20, %21 : vector<16x128xf32>
    %cst_9 = arith.constant 2.000000e+00 : f32
    %23 = vector.broadcast %cst_9 : f32 to vector<16x128xf32>
    %24 = arith.mulf %23, %22 : vector<16x128xf32>
    %c0_10 = arith.constant 0 : index
    %c0_11 = arith.constant 0 : index
    %25 = vector.load %arg1[%c0_10, %c0_11] : memref<16x128xf32, #tpu.memory_space<vmem>>, vector<16x128xf32>
    tpu.vector_store %arg1[%c0_10, %c0_11], %24 {strides = array<i32>} : memref<16x128xf32, #tpu.memory_space<vmem>>, vector<16x128xf32>,
    return
  }
}

</mosaic_0001>

<bundles_post_ra>
// kernel: tpu_custom_call.1
= control target key start
LH: loop header
LB: loop body
LE: loop exit
PB: predicated region body
PF: predicated region fallthrough
CT: control target
= control target key end

     0   :  { %6 = vsyncpa [#allocation3], 0  ;;  %s174_s0 = inlined_call_operand.hbm [shape: f32[16,128], index: 0, kind: input, shape index: {}, may-alias: {0,1}]   ;;  %s175_s1 = inlined_call_operand.hbm [shape: f32[16,128], index: 1, kind: output, shape index: {}, may-alias: {0,1}]  }
   0x1   :  { %7 = vsyncpa [#allocation4], 0  ;;  %s12_s8 = sshll.u32 %s174_s0, 4  ;;  %s148_s9 = smov [#allocation2]   ;;  %s13_s8 = int_to_ptr.hbm [resolvable:$true] %s12_s8 }
   0x2   :  { %s14_s10 = sshll.u32 %s148_s9, 4  ;;  %s149_s11 = smov 128   ;;  %s15_s10 = int_to_ptr.vmem [resolvable:$true] %s14_s10 }
   0x3   :  { %s150_s12 = smov 8  }
   0x4   :  { %20 = dma.hbm_to_vmem [thread:$0]  %s13_s8, 256, %s15_s10, [#allocation3], %s149_s11, %s149_s11, %s150_s12  }
   0x5   :  { %144 = dma.done.wait [#allocation3], 256  }
   0x6   :  { %145 = vsyncadd [#allocation3], 4294967040  ;;  %v25_v0 = vld [vmem:[#allocation2] sm:$0xff]  ;;  %v26_v1 = vld [vmem:[#allocation2 + $0x8] sm:$0xff]  ;;  %s151_s0 = smov [#allocation5]   ;;  %s63_s16 = sshll.u32 %s175_s1, 4  ;;  %s64_s16 = int_to_ptr.hbm [resolvable:$true] %s63_s16 }
   0x7   :  { %v27_v2 = vmul.f32 0.5, %v25_v0  ;;  %v28_v3 = vmul.f32 0.5, %v26_v1  ;;  %s61_s13 = sshll.u32 %s151_s0, 4  ;;  %s62_s13 = int_to_ptr.vmem [resolvable:$true] %s61_s13 }
   0x9   :  { %80 = vtanh.f32 %v27_v2 }
   0xa   :  { %82 = vtanh.f32 %v28_v3 }
   0xf   :  { %v81_v4 = vpop.eup %80 }
  0x10   :  { %v83_v5 = vpop.eup %82  ;;  %v31_v6 = vmul.f32 0.25, %v81_v4 }
  0x11   :  { %v32_v7 = vmul.f32 0.25, %v83_v5 }
  0x12   :  { %v33_v8 = vadd.f32 0.25, %v31_v6 }
  0x13   :  { %v34_v9 = vadd.f32 0.25, %v32_v7 }
  0x14   :  { %84 = vtanh.f32 %v33_v8 }
  0x15   :  { %86 = vtanh.f32 %v34_v9 }
  0x1a   :  { %v85_v10 = vpop.eup %84 }
  0x1b   :  { %v87_v11 = vpop.eup %86  ;;  %v37_v12 = vmul.f32 0.25, %v85_v10 }
  0x1c   :  { %v38_v13 = vmul.f32 0.25, %v87_v11 }
  0x1d   :  { %v39_v14 = vadd.f32 0.25, %v37_v12 }
  0x1e   :  { %v40_v15 = vadd.f32 0.25, %v38_v13 }
  0x1f   :  { %88 = vtanh.f32 %v39_v14 }
  0x20   :  { %90 = vtanh.f32 %v40_v15 }
  0x25   :  { %v89_v16 = vpop.eup %88 }
  0x26   :  { %v91_v17 = vpop.eup %90  ;;  %v43_v18 = vmul.f32 0.25, %v89_v16 }
  0x27   :  { %v44_v19 = vmul.f32 0.25, %v91_v17 }
  0x28   :  { %v45_v20 = vadd.f32 0.25, %v43_v18 }
  0x29   :  { %v46_v21 = vadd.f32 0.25, %v44_v19 }
  0x2a   :  { %92 = vtanh.f32 %v45_v20 }
  0x2b   :  { %94 = vtanh.f32 %v46_v21 }
  0x30   :  { %v93_v22 = vpop.eup %92 }
  0x31   :  { %v95_v23 = vpop.eup %94  ;;  %v49_v24 = vmul.f32 0.25, %v93_v22 }
  0x32   :  { %v50_v25 = vmul.f32 0.25, %v95_v23 }
  0x33   :  { %v51_v26 = vadd.f32 0.25, %v49_v24 }
  0x34   :  { %v52_v27 = vadd.f32 0.25, %v50_v25 }
  0x35   :  { %v53_v28 = vmul.f32 2.0, %v51_v26 }
  0x36   :  { %v54_v29 = vmul.f32 2.0, %v52_v27 }
  0x37   :  { %55 = vst [vmem:[#allocation5] sm:$0xff] %v53_v28 }
  0x38   :  { %56 = vst [vmem:[#allocation5 + $0x8] sm:$0xff] %v54_v29 }
  0x39   :  { %69 = dma.vmem_to_hbm [thread:$0]  %s62_s13, 256, %s64_s16, [#allocation4], %s149_s11, %s149_s11, %s150_s12  }
  0x3a   :  { %146 = dma.done.wait [#allocation4], 256  }
  0x3b   :  { %147 = vsyncadd [#allocation4], 4294967040 }
  0x3c   :  { %74 = vsyncpa [#allocation3], 1 }
  0x3d   :  { %75 = vsyncpa [#allocation4], 1 }

</bundles_post_ra>
